<compile_context>
chip_gen: v6e
topology: v6e:2x2x1
jax: 0.10.0
libtpu: 0.0.40
codegen_flags: <defaults>
</compile_context>

<pallas_src>
import functools

import jax
import jax.numpy as jnp
from jax.experimental import pallas as pl
from jax.experimental.pallas import tpu as pltpu


def _round_up(x: int, m: int) -> int:
    return (x + m - 1) // m * m


def _cdiv(a: int, b: int) -> int:
    return -(-a // b)


def _sublane_for(itemsize: int) -> int:
    # f32 -> 8, bf16/f16 -> 16, int8/fp8 -> 32 sublanes per vreg tile.
    return {4: 8, 2: 16, 1: 32}.get(itemsize, 8)


def _vmem_capacity_bytes() -> int:
    try:
        return int(pltpu.get_tpu_info().vmem_capacity_bytes)
    except Exception:
        # Conservative fallback: v7x has 64 MiB per TensorCore.
        return 64 * 1024 * 1024


def _vmem_block_bytes(tm, tn, tk, x_isz, w_isz, b_isz, o_isz) -> int:
    # Double-buffered input/output blocks + persistent f32 accumulator scratch.
    return (2 * (tm * tk * x_isz + tk * tn * w_isz + tn * b_isz + tm * tn * o_isz)
            + 4 * tm * tn)


def intermediate_kernel(x_ref, w_ref, b_ref, o_ref, acc_ref):
    # x_ref: (tm, tk)  w_ref: (tk, tn)  b_ref: (1, tn)  o_ref: (tm, tn)
    # acc_ref: (tm, tn) f32 scratch, persistent across the k (innermost) axis.
    k = pl.program_id(2)

    @pl.when(k == 0)
    def _():
        # Fold the bias into the accumulator init: replaces a zero-fill + a
        # (tm, tn) VPU add in the epilogue. b_ref is resident (depends only on n).
        acc_ref[...] = jnp.broadcast_to(
            b_ref[...].astype(jnp.float32), acc_ref.shape)

    acc_ref[...] += jnp.dot(
        x_ref[...], w_ref[...], preferred_element_type=jnp.float32)

    @pl.when(k == pl.num_programs(2) - 1)
    def _():
        o_ref[...] = jnp.maximum(acc_ref[...], 0.0).astype(o_ref.dtype)  # ReLU


def _select_tiles(M, H, I, sublane, x_isz, w_isz, b_isz, o_isz, vmem_budget,
                  tile_m, tile_n, tile_k):
    """Pick (tile_m, tile_n, tile_k) honoring explicit overrides, alignment and
    the VMEM budget."""
    Kp128 = _round_up(H, 128)
    Np128 = _round_up(I, 128)
    explicit = (tile_m is not None, tile_n is not None, tile_k is not None)

    # --- tile_k: collapse the contraction when moderate so the weight strip is
    # resident across the inner m loop; otherwise balance ~2K tiles.
    if tile_k is None:
        if Kp128 <= 4096:
            tile_k = Kp128
        else:
            k_tiles = _cdiv(Kp128, 2048)
            tile_k = _round_up(_cdiv(Kp128, k_tiles), 128)
    else:
        tile_k = min(_round_up(tile_k, 128), Kp128)

    # --- tile_m: derive from M so padding waste stays small (<= one sublane
    # group per tile), targeting ~512 rows.
    if tile_m is None:
        m_tiles = max(1, _cdiv(M, 512))
        tile_m = _round_up(_cdiv(M, m_tiles), sublane)
    else:
        tile_m = min(_round_up(tile_m, sublane), _round_up(M, sublane))

    # --- tile_n: wide-N for small-M (weight-stream-bound, step-overhead-bound)
    # calls, ~512 otherwise; balanced so Np doesn't balloon.
    if tile_n is None:
        tn_target = 1024 if M <= 64 else 512
        n_tiles = max(1, _cdiv(Np128, tn_target))
        tile_n = _round_up(_cdiv(Np128, n_tiles), 128)
    else:
        tile_n = min(_round_up(tile_n, 128), Np128)

    # --- Fit to the VMEM budget (only shrink auto-chosen dims).
    def fits():
        return _vmem_block_bytes(tile_m, tile_n, tile_k,
                                 x_isz, w_isz, b_isz, o_isz) <= vmem_budget

    while not fits():
        if not explicit[1] and tile_n > 256:
            tile_n = _round_up(tile_n // 2, 128)
        elif not explicit[0] and tile_m > 256:
            tile_m = _round_up(tile_m // 2, sublane)
        elif not explicit[2] and tile_k > 512:
            tile_k = _round_up(tile_k // 2, 128)
        elif not explicit[0] and tile_m > sublane:
            tile_m = _round_up(tile_m // 2, sublane)
        elif not explicit[1] and tile_n > 128:
            tile_n = 128
        elif not explicit[2] and tile_k > 128:
            tile_k = _round_up(tile_k // 2, 128)
        else:
            break

    # --- v7x megacore: if only one (m, n) tile, split n in two (when clean) so
    # both TensorCores get a "parallel" tile to work on.
    if (tile_n is not None and not explicit[1]
            and _cdiv(_round_up(I, tile_n), tile_n) * _cdiv(_round_up(M, tile_m), tile_m) == 1
            and Np128 >= 256 and (Np128 // 128) % 2 == 0):
        tile_n = Np128 // 2

    return tile_m, tile_n, tile_k


@functools.partial(
    jax.jit, static_argnames=("compute_dtype", "tile_m", "tile_n", "tile_k"))
def intermediate_forward(hidden_states, weight, bias, *, compute_dtype=None,
                         tile_m=None, tile_n=None, tile_k=None):
    """relu(hidden_states @ weight + bias)

    hidden_states: [..., H]  (leading dims flattened to M rows)
    weight:        [H, I]
    bias:          [I]
    compute_dtype: optional dtype (e.g. jnp.bfloat16) for the MXU operands;
                   accumulation stays f32 and output keeps the input dtype.
    """
    orig_shape = hidden_states.shape
    H = orig_shape[-1]
    I = weight.shape[1]
    out_dtype = hidden_states.dtype

    x2d = hidden_states.reshape(-1, H)
    M = x2d.shape[0]

    w = weight
    if compute_dtype is not None:
        x2d = x2d.astype(compute_dtype)
        w = w.astype(compute_dtype)

    x_isz = jnp.dtype(x2d.dtype).itemsize
    w_isz = jnp.dtype(w.dtype).itemsize
    b_isz = jnp.dtype(bias.dtype).itemsize
    o_isz = jnp.dtype(out_dtype).itemsize
    sublane = max(_sublane_for(x_isz), _sublane_for(o_isz))

    vmem_cap = _vmem_capacity_bytes()
    vmem_budget = int(0.75 * vmem_cap)   # headroom for XLA's surrounding fusions

    tile_m, tile_n, tile_k = _select_tiles(
        M, H, I, sublane, x_isz, w_isz, b_isz, o_isz, vmem_budget,
        tile_m, tile_n, tile_k)

    Mp = _round_up(M, tile_m)
    Np = _round_up(I, tile_n)
    Kp = _round_up(H, tile_k)

    # Zero-pad to tile multiples only when needed (zero K-rows contribute nothing;
    # padded M rows / N cols are sliced off the output). In production the padded
    # weight/bias should be cached outside the per-call path; for typical model
    # dims (H, I multiples of 128) no weight padding happens at all.
    if (Mp, Kp) != (M, H):
        x2d = jnp.pad(x2d, ((0, Mp - M), (0, Kp - H)))
    if (Kp, Np) != (H, I):
        w = jnp.pad(w, ((0, Kp - H), (0, Np - I)))
    b2d = bias.reshape(1, I)
    if Np != I:
        b2d = jnp.pad(b2d, ((0, 0), (0, Np - I)))

    grid = (Np // tile_n, Mp // tile_m, Kp // tile_k)  # (n, m, k); k innermost

    vmem_need = _vmem_block_bytes(tile_m, tile_n, tile_k,
                                  x_isz, w_isz, b_isz, o_isz)
    # Never request more than physical VMEM (v7x: 64 MiB); size from real bytes.
    vmem_limit = int(min(int(0.9 * vmem_cap),
                         max(vmem_need + (2 << 20), 16 << 20)))

    cost = pl.CostEstimate(
        flops=2 * Mp * Np * Kp,
        bytes_accessed=(x2d.size * x_isz + w.size * w_isz + b2d.size * b_isz
                        + Mp * Np * o_isz),
        transcendentals=0,
    )

    out = pl.pallas_call(
        intermediate_kernel,
        out_shape=jax.ShapeDtypeStruct((Mp, Np), out_dtype),
        grid_spec=pltpu.PrefetchScalarGridSpec(
            num_scalar_prefetch=0,
            grid=grid,
            in_specs=[
                # x row/contraction tile: depends on (m, k)
                pl.BlockSpec((tile_m, tile_k), lambda j, i, k: (i, k)),
                # weight tile: depends only on (k, n). With tile_k == Kp the index
                # is constant across the inner m loop -> weight strip stays resident.
                pl.BlockSpec((tile_k, tile_n), lambda j, i, k: (k, j)),
                # bias strip: depends only on n (outermost)
                pl.BlockSpec((1, tile_n), lambda j, i, k: (0, j)),
            ],
            out_specs=pl.BlockSpec((tile_m, tile_n), lambda j, i, k: (i, j)),
            scratch_shapes=[pltpu.VMEM((tile_m, tile_n), jnp.float32)],
        ),
        compiler_params=pltpu.CompilerParams(
            dimension_semantics=("parallel", "parallel", "arbitrary"),
            vmem_limit_bytes=vmem_limit,
        ),
        cost_estimate=cost,
    )(x2d, w, b2d)

    out = out[:M, :I]
    return out.reshape(*orig_shape[:-1], I)


if __name__ == "__main__":
    key = jax.random.PRNGKey(0)
    k_x, k_w, k_b = jax.random.split(key, 3)

    batch, seq, hidden_size, intermediate_size = 2, 8, 32, 64

    # nn.Linear-equivalent params (W [I,H], b [I]); stored transposed as [H, I].
    bound = 1.0 / (hidden_size ** 0.5)
    weight = jax.random.uniform(
        k_w, (hidden_size, intermediate_size),
        minval=-bound, maxval=bound, dtype=jnp.float32)
    bias = jax.random.uniform(
        k_b, (intermediate_size,),
        minval=-bound, maxval=bound, dtype=jnp.float32)

    hidden_states = jax.random.normal(
        k_x, (batch, seq, hidden_size), dtype=jnp.float32)

    # 1) f32, small shape — exact reference check (auto tiles, single grid step).
    out = jax.block_until_ready(intermediate_forward(hidden_states, weight, bias))
    ref = jnp.maximum(hidden_states @ weight + bias, 0.0)
    assert out.shape == (batch, seq, intermediate_size)
    assert jnp.allclose(out, ref, atol=1e-5, rtol=1e-5)

    # 2) Non-divisible M — covers padding + M-derived tile_m.
    k_x2 = jax.random.fold_in(k_x, 1)
    hs2 = jax.random.normal(k_x2, (3, 37, hidden_size), dtype=jnp.float32)
    out2 = jax.block_until_ready(intermediate_forward(hs2, weight, bias))
    ref2 = jnp.maximum(hs2 @ weight + bias, 0.0)
    assert out2.shape == (3, 37, intermediate_size)
    assert jnp.allclose(out2, ref2, atol=1e-5, rtol=1e-5)

    # 3) Multi-tile grid (m, n, k all > 1) with explicit small tiles — exercises
    #    the k-accumulation loop and bias-in-init across k steps.
    H3, I3 = 256, 384
    k_w3, k_b3, k_x3 = jax.random.split(jax.random.fold_in(key, 3), 3)
    b3 = 1.0 / (H3 ** 0.5)
    w3 = jax.random.uniform(k_w3, (H3, I3), minval=-b3, maxval=b3,
                            dtype=jnp.float32)
    bias3 = jax.random.uniform(k_b3, (I3,), minval=-b3, maxval=b3,
                               dtype=jnp.float32)
    hs3 = jax.random.normal(k_x3, (4, 64, H3), dtype=jnp.float32)
    out3 = jax.block_until_ready(
        intermediate_forward(hs3, w3, bias3, tile_m=128, tile_n=128, tile_k=128))
    ref3 = jnp.maximum(hs3 @ w3 + bias3, 0.0)
    assert out3.shape == (4, 64, I3)
    assert jnp.allclose(out3, ref3, atol=1e-4, rtol=1e-4)

    # 4) bf16 compute path (f32 accumulation) — the production-dtype path on
    #    v6e/v7x; compared against a bf16-input / f32-accum JAX reference.
    out4 = jax.block_until_ready(
        intermediate_forward(hidden_states, weight, bias,
                             compute_dtype=jnp.bfloat16))
    ref4 = jnp.maximum(
        jnp.dot(hidden_states.astype(jnp.bfloat16),
                weight.astype(jnp.bfloat16),
                preferred_element_type=jnp.float32) + bias, 0.0)
    assert out4.shape == (batch, seq, intermediate_size)
    assert jnp.allclose(out4, ref4, atol=2e-2, rtol=2e-2)

    print("KERNEL_OK")
</pallas_src>

<mosaic_0001>
module attributes {stable_mosaic.version = 11 : i64} {
  func.func @intermediate_kernel(%arg0: i32, %arg1: i32, %arg2: i32, %arg3: memref<16x128xf32, #tpu.memory_space<vmem>>, %arg4: memref<128x128xf32, #tpu.memory_space<vmem>>, %arg5: memref<1x128xf32, #tpu.memory_space<vmem>>, %arg6: memref<16x128xf32, #tpu.memory_space<vmem>>, %arg7: memref<16x128xf32, #tpu.memory_space<vmem>>) attributes {dimension_semantics = [#tpu.dimension_semantics<parallel>, #tpu.dimension_semantics<parallel>, #tpu.dimension_semantics<arbitrary>], iteration_bounds = array<i64: 1, 1, 1>, scalar_prefetch = 0 : i64, scratch_operands = 1 : i64, tpu.core_type = #tpu.core_type<tc>, window_params = [{transform_indices = @transform_0, window_bounds = array<i64: 16, 128>}, {transform_indices = @transform_1, window_bounds = array<i64: 128, 128>}, {transform_indices = @transform_2, window_bounds = array<i64: 1, 128>}, {transform_indices = @transform_3, window_bounds = array<i64: 16, 128>}]} {
    %c0_i32 = arith.constant 0 : i32
    %0 = arith.cmpi eq, %arg2, %c0_i32 : i32
    %1 = arith.extui %0 : i1 to i32
    %c0_i32_0 = arith.constant 0 : i32
    %2 = arith.cmpi ne, %1, %c0_i32_0 : i32
    scf.if %2 {
      %c0_10 = arith.constant 0 : index
      %c0_11 = arith.constant 0 : index
      %12 = vector.load %arg5[%c0_10, %c0_11] : memref<1x128xf32, #tpu.memory_space<vmem>>, vector<1x128xf32>
      %13 = vector.shape_cast %12 : vector<1x128xf32> to vector<1x128xf32>
      %14 = vector.broadcast %13 : vector<1x128xf32> to vector<16x128xf32>
      %c0_12 = arith.constant 0 : index
      %c0_13 = arith.constant 0 : index
      %15 = vector.load %arg7[%c0_12, %c0_13] : memref<16x128xf32, #tpu.memory_space<vmem>>, vector<16x128xf32>
      tpu.vector_store %arg7[%c0_12, %c0_13], %14 {strides = array<i32>} : memref<16x128xf32, #tpu.memory_space<vmem>>, vector<16x128xf32>,
    } else {
    }
    %c0 = arith.constant 0 : index
    %c0_1 = arith.constant 0 : index
    %3 = vector.load %arg7[%c0, %c0_1] : memref<16x128xf32, #tpu.memory_space<vmem>>, vector<16x128xf32>
    %c0_2 = arith.constant 0 : index
    %c0_3 = arith.constant 0 : index
    %4 = vector.load %arg3[%c0_2, %c0_3] : memref<16x128xf32, #tpu.memory_space<vmem>>, vector<16x128xf32>
    %c0_4 = arith.constant 0 : index
    %c0_5 = arith.constant 0 : index
    %5 = vector.load %arg4[%c0_4, %c0_5] : memref<128x128xf32, #tpu.memory_space<vmem>>, vector<128x128xf32>
    %cst = arith.constant dense<0.000000e+00> : vector<16x128xf32>
    %6 = tpu.matmul %4, %5, %cst {dimension_numbers = #tpu.dot_dimension_numbers<[1], [0], [0], [1], [0, 0, 1, 1], [], []>} : vector<16x128xf32>, vector<128x128xf32>, vector<16x128xf32> -> vector<16x128xf32>
    %7 = arith.addf %3, %6 : vector<16x128xf32>
    %c0_6 = arith.constant 0 : index
    %c0_7 = arith.constant 0 : index
    %8 = vector.load %arg7[%c0_6, %c0_7] : memref<16x128xf32, #tpu.memory_space<vmem>>, vector<16x128xf32>
    tpu.vector_store %arg7[%c0_6, %c0_7], %7 {strides = array<i32>} : memref<16x128xf32, #tpu.memory_space<vmem>>, vector<16x128xf32>,
    %c0_i32_8 = arith.constant 0 : i32
    %9 = arith.cmpi eq, %arg2, %c0_i32_8 : i32
    %10 = arith.extui %9 : i1 to i32
    %c0_i32_9 = arith.constant 0 : i32
    %11 = arith.cmpi ne, %10, %c0_i32_9 : i32
    scf.if %11 {
      %c0_10 = arith.constant 0 : index
      %c0_11 = arith.constant 0 : index
      %12 = vector.load %arg7[%c0_10, %c0_11] : memref<16x128xf32, #tpu.memory_space<vmem>>, vector<16x128xf32>
      %cst_12 = arith.constant 0.000000e+00 : f32
      %13 = vector.broadcast %cst_12 : f32 to vector<16x128xf32>
      %14 = arith.maximumf %12, %13 : vector<16x128xf32>
      %c0_13 = arith.constant 0 : index
      %c0_14 = arith.constant 0 : index
      %15 = vector.load %arg6[%c0_13, %c0_14] : memref<16x128xf32, #tpu.memory_space<vmem>>, vector<16x128xf32>
      tpu.vector_store %arg6[%c0_13, %c0_14], %14 {strides = array<i32>} : memref<16x128xf32, #tpu.memory_space<vmem>>, vector<16x128xf32>,
    } else {
    }
    return
  }
  func.func @transform_0(%arg0: i32, %arg1: i32, %arg2: i32) -> (i32, i32) {
    %c0_i32 = arith.constant 0 : i32
    return %arg1, %arg2 : i32, i32
  }
  func.func @transform_1(%arg0: i32, %arg1: i32, %arg2: i32) -> (i32, i32) {
    %c0_i32 = arith.constant 0 : i32
    return %arg2, %arg0 : i32, i32
  }
  func.func @transform_2(%arg0: i32, %arg1: i32, %arg2: i32) -> (i32, i32) {
    %c0_i32 = arith.constant 0 : i32
    %c0_i32_0 = arith.constant 0 : i32
    return %c0_i32, %arg0 : i32, i32
  }
  func.func @transform_3(%arg0: i32, %arg1: i32, %arg2: i32) -> (i32, i32) {
    %c0_i32 = arith.constant 0 : i32
    return %arg1, %arg0 : i32, i32
  }
}

</mosaic_0001>

<bundles_post_ra>
// kernel: intermediate_forward.1
= control target key start
LH: loop header
LB: loop body
LE: loop exit
PB: predicated region body
PF: predicated region fallthrough
CT: control target
= control target key end

     0   :  { %s276_s1 = inlined_call_operand.vmem [shape: f32[128,128], index: 1, kind: input, shape index: {}]   ;;  %s277_s0 = inlined_call_operand.vmem [shape: f32[16,128], index: 0, kind: input, shape index: {}]   ;;  %s278_s2 = inlined_call_operand.vmem [shape: f32[1,128], index: 2, kind: input, shape index: {}]   ;;  %s279_s3 = inlined_call_operand.vmem [shape: f32[16,128], index: 3, kind: output, shape index: {}]  }
   0x1   :  { %v46_v0 = vld [vmem:[%s276_s1 + $0x78] sm:$0xff]  ;;  %v45_v1 = vld [vmem:[%s276_s1 + $0x70] sm:$0xff]  ;;  %v44_v2 = vld [vmem:[%s276_s1 + $0x68] sm:$0xff] }
   0x2   :  { %158 = vmatprep.subr.mxu0 %v46_v0  ;;  %v43_v3 = vld [vmem:[%s276_s1 + $0x60] sm:$0xff]  ;;  %v42_v5 = vld [vmem:[%s276_s1 + $0x58] sm:$0xff]  ;;  %v41_v6 = vld [vmem:[%s276_s1 + $0x50] sm:$0xff] }
   0x3   :  { %159 = vmatpush3.msra.mxu0 %v46_v0  ;;  %v29_v4 = vld [vmem:[%s277_s0] sm:$0xff]  ;;  %v40_v7 = vld [vmem:[%s276_s1 + $0x48] sm:$0xff]  ;;  %v38_v9 = vld [vmem:[%s276_s1 + $0x38] sm:$0xff] }
   0x4   :  { %160 = vmatprep.subr.mxu0 %v45_v1  ;;  %190 = vmatprep.mubr.f32.mxu0 %v29_v4  ;;  %v39_v8 = vld [vmem:[%s276_s1 + $0x40] sm:$0xff]  ;;  %v37_v10 = vld [vmem:[%s276_s1 + $0x30] sm:$0xff]  ;;  %v36_v11 = vld [vmem:[%s276_s1 + $0x28] sm:$0xff] }
   0x5   :  { %161 = vmatpush3.msra.mxu0 %v45_v1  ;;  %v35_v12 = vld [vmem:[%s276_s1 + $0x20] sm:$0xff]  ;;  %v34_v13 = vld [vmem:[%s276_s1 + $0x18] sm:$0xff]  ;;  %v33_v14 = vld [vmem:[%s276_s1 + $0x10] sm:$0xff] }
   0x6   :  { %162 = vmatprep.subr.mxu0 %v44_v2  ;;  %v32_v15 = vld [vmem:[%s276_s1 + $0x8] sm:$0xff]  ;;  %v31_v16 = vld [vmem:[%s276_s1] sm:$0xff] }
   0x7   :  { %163 = vmatpush3.msra.mxu0 %v44_v2  ;;  %v30_v17 = vld [vmem:[%s277_s0 + $0x8] sm:$0xff]  ;;  %v139_v18 = vld [vmem:[%s278_s2] ss:$0 sm:$0xff] }
   0x8   :  { %164 = vmatprep.subr.mxu0 %v43_v3 }
   0x9   :  { %165 = vmatpush3.msra.mxu0 %v43_v3 }
   0xa   :  { %166 = vmatprep.subr.mxu0 %v42_v5 }
   0xb   :  { %167 = vmatpush3.msra.mxu0 %v42_v5 }
   0xc   :  { %168 = vmatprep.subr.mxu0 %v41_v6 }
   0xd   :  { %169 = vmatpush3.msra.mxu0 %v41_v6 }
   0xe   :  { %170 = vmatprep.subr.mxu0 %v40_v7 }
   0xf   :  { %171 = vmatpush3.msra.mxu0 %v40_v7 }
  0x10   :  { %172 = vmatprep.subr.mxu0 %v39_v8 }
  0x11   :  { %173 = vmatpush3.msra.mxu0 %v39_v8 }
  0x12   :  { %174 = vmatprep.subr.mxu0 %v38_v9 }
  0x13   :  { %175 = vmatpush3.msra.mxu0 %v38_v9 }
  0x14   :  { %176 = vmatprep.subr.mxu0 %v37_v10 }
  0x15   :  { %177 = vmatpush3.msra.mxu0 %v37_v10 }
  0x16   :  { %178 = vmatprep.subr.mxu0 %v36_v11 }
  0x17   :  { %179 = vmatpush3.msra.mxu0 %v36_v11 }
  0x18   :  { %180 = vmatprep.subr.mxu0 %v35_v12 }
  0x19   :  { %181 = vmatpush3.msra.mxu0 %v35_v12 }
  0x1a   :  { %182 = vmatprep.subr.mxu0 %v34_v13 }
  0x1b   :  { %183 = vmatpush3.msra.mxu0 %v34_v13 }
  0x1c   :  { %184 = vmatprep.subr.mxu0 %v33_v14 }
  0x1d   :  { %185 = vmatpush3.msra.mxu0 %v33_v14 }
  0x1e   :  { %186 = vmatprep.subr.mxu0 %v32_v15 }
  0x1f   :  { %187 = vmatpush3.msra.mxu0 %v32_v15 }
  0x20   :  { %188 = vmatprep.subr.mxu0 %v31_v16 }
  0x21   :  { %189 = vmatpush3.msra.mxu0 %v31_v16 }
  0x22   :  { %191 = vmatmul.mubr.f32.vlgmr.msra.gmra.mxu0 %v30_v17 }
  0xe2   :  { %v192_v19 = vpop.f32.mrf.mxu0 }
  0xe3   :  { %v123_v20 = vadd.f32 %v192_v19, %v139_v18 }
  0xe4   :  { %v113_v21 = vpop.f32.mrf.mxu0 }
  0xe5   :  { %v132_v22 = vmax.f32 %v123_v20, 0.0  ;;  %v122_v23 = vadd.f32 %v139_v18, %v113_v21 }
  0xe7   :  { %134 = vst [vmem:[%s279_s3 + $0x8] sm:$0xff] %v132_v22  ;;  %v131_v24 = vmax.f32 %v122_v23, 0.0 }
  0xe9   :  { %133 = vst [vmem:[%s279_s3] sm:$0xff] %v131_v24 }

</bundles_post_ra>
